<compile_context>
chip_gen: v7x
topology: tpu7x:2x2x1
jax: 0.10.0
libtpu: 0.0.40
codegen_flags: <defaults>
</compile_context>

<pallas_src>
import functools

import jax
import jax.numpy as jnp
from jax.experimental import pallas as pl
from jax.experimental.pallas import tpu as pltpu


EPS = 1e-8
_LANE = 128
_SUBLANE = 8
_DEFAULT_TILE_BUDGET = 24 * 1024 * 1024   # target double-buffered VMEM footprint
_DEFAULT_VMEM_LIMIT = 32 * 1024 * 1024    # safe scoped-VMEM limit on v5e/v6e/v7x


def _poe_kernel(*refs, n_experts, n_prior):
    """refs = (mu_0..mu_{E-1}, logvar_0..logvar_{E-1}, pd_mu, pd_logvar)."""
    mu_refs = refs[:n_experts]
    lv_refs = refs[n_experts:2 * n_experts]
    pd_mu_ref = refs[2 * n_experts]
    pd_lv_ref = refs[2 * n_experts + 1]

    # Prior experts are N(0, 1): mu = 0 contributes nothing to the numerator;
    # each contributes T = 1/(exp(0)+eps) to the precision sum.  Starting the
    # accumulation from the prior term matches the reference ordering (priors
    # are concatenated in front of the real experts before the reduction).
    prior_t = jnp.float32(n_prior) * (1.0 / (jnp.exp(jnp.float32(0.0)) + EPS))
    shape = pd_mu_ref.shape
    sum_t = jnp.full(shape, prior_t, dtype=jnp.float32)
    num = jnp.zeros(shape, dtype=jnp.float32)

    # Static unrolled accumulation over the expert axis: plain VPU adds/muls,
    # one EUP exp + one divide per expert element, no E-sized intermediates.
    for e in range(n_experts):
        lv = lv_refs[e][...].astype(jnp.float32)
        mu = mu_refs[e][...].astype(jnp.float32)
        t = 1.0 / (jnp.exp(lv) + EPS)          # eps-consistent with reference
        sum_t = sum_t + t
        num = num + mu * t

    inv_sum = 1.0 / sum_t                      # pd_var
    pd_mu_ref[...] = (num * inv_sum).astype(pd_mu_ref.dtype)
    pd_lv_ref[...] = jnp.log(inv_sum).astype(pd_lv_ref.dtype)


def _tile_candidates(n, align):
    """Tile sizes t with t % align == 0 and t | n, plus the full extent n
    (full array dims are exempt from the (8,128) alignment rule)."""
    cands = {n}
    t = align
    while t < n:
        if n % t == 0:
            cands.add(t)
        t += align
    return sorted(cands, reverse=True)


def _select_tiles(B, D, n_experts, budget_bytes):
    """Pick a (tb, tn) block so the double-buffered VMEM footprint of all
    2E inputs + 2 outputs stays under `budget_bytes`, preferring >= 2 grid
    blocks (so the v7x megacore can shard the parallel axes) and, for ties,
    wider lane-dense blocks (fewer grid steps / DMA descriptors)."""
    bytes_per_elem = (2 * n_experts + 2) * 4 * 2   # f32, double-buffered
    row_tiles = _tile_candidates(B, _SUBLANE)
    col_tiles = _tile_candidates(D, _LANE)

    cands = []
    for tb in row_tiles:
        for tn in col_tiles:
            fp = tb * tn * bytes_per_elem
            nblocks = (B // tb) * (D // tn)
            cands.append((tb, tn, fp, nblocks))

    fitting = [c for c in cands if c[2] <= budget_bytes]
    if not fitting:
        # Nothing fits (huge ragged dims that cannot be tiled): take the
        # smallest candidate; the caller raises the VMEM limit accordingly.
        return min(cands, key=lambda c: c[2])
    multi = [c for c in fitting if c[3] >= 2]
    pool = multi if multi else fitting
    # Biggest block first (amortizes ~0.35us/step overhead), then widest lanes.
    return max(pool, key=lambda c: (c[2], c[1]))


def product_of_experts_zipped(zipped, size, *, tile_budget_bytes=_DEFAULT_TILE_BUDGET):
    """JAX/Pallas equivalent of ProductOfExperts_Zipped.forward.

    Args:
      zipped: list of (mu, logvar) pairs, each of shape (B, D).
      size:   3-tuple (n_prior, _, D) matching the PyTorch module's `size`.
      tile_budget_bytes: target double-buffered VMEM footprint per grid step.

    Returns:
      (pd_mu, pd_logvar), each of shape (B, D).
    """
    mus = [jnp.asarray(p[0]) for p in zipped]
    logvars = [jnp.asarray(p[1]) for p in zipped]
    n_experts = len(mus)
    B, D = mus[0].shape
    n_prior = int(size[0])
    dtype = mus[0].dtype

    tb, tn, footprint, _ = _select_tiles(B, D, n_experts, tile_budget_bytes)
    grid = (B // tb, D // tn)
    spec = pl.BlockSpec((tb, tn), lambda i, j: (i, j))

    # Leave headroom above the double-buffered footprint.  (Only the "nothing
    # fits" fallback can push this above the default 32 MiB.)
    vmem_limit = max(_DEFAULT_VMEM_LIMIT, footprint + 4 * 1024 * 1024)

    kernel = functools.partial(_poe_kernel, n_experts=n_experts, n_prior=n_prior)
    pd_mu, pd_logvar = pl.pallas_call(
        kernel,
        out_shape=(
            jax.ShapeDtypeStruct((B, D), dtype),
            jax.ShapeDtypeStruct((B, D), dtype),
        ),
        grid=grid,
        in_specs=[spec] * (2 * n_experts),
        out_specs=(spec, spec),
        compiler_params=pltpu.CompilerParams(
            dimension_semantics=("parallel", "parallel"),
            vmem_limit_bytes=vmem_limit,
        ),
    )(*mus, *logvars)
    return pd_mu, pd_logvar


def _reference(zipped, size):
    """Pure-JAX reference (mirrors the PyTorch code path exactly)."""
    mus = [p[0] for p in zipped]
    logvars = [p[1] for p in zipped]
    B, D = mus[0].shape
    mu = jnp.zeros((size[0], B, D), dtype=jnp.float32)
    logvar = jnp.log(jnp.ones((size[0], B, D), dtype=jnp.float32))
    for i in range(len(mus)):
        mu = jnp.concatenate((mu, mus[i][None]), axis=0)
        logvar = jnp.concatenate((logvar, logvars[i][None]), axis=0)
    var = jnp.exp(logvar) + EPS
    T = 1.0 / var
    pd_mu = jnp.sum(mu * T, axis=0) / jnp.sum(T, axis=0)
    pd_var = 1.0 / jnp.sum(T, axis=0)
    return pd_mu, jnp.log(pd_var)


def _make_zipped(key, n_modalities, batch, latent):
    zipped = []
    for _ in range(n_modalities):
        key, k1, k2 = jax.random.split(key, 3)
        mu_i = jax.random.normal(k1, (batch, latent), dtype=jnp.float32)
        logvar_i = 0.1 * jax.random.normal(k2, (batch, latent), dtype=jnp.float32)
        zipped.append((mu_i, logvar_i))
    return key, zipped


def _check(zipped, size, **kw):
    pd_mu, pd_logvar = product_of_experts_zipped(zipped, size, **kw)
    pd_mu = jax.block_until_ready(pd_mu)
    pd_logvar = jax.block_until_ready(pd_logvar)
    ref_mu, ref_logvar = _reference(zipped, size)
    assert pd_mu.shape == ref_mu.shape and pd_logvar.shape == ref_logvar.shape
    assert jnp.allclose(pd_mu, ref_mu, atol=1e-5, rtol=1e-5)
    assert jnp.allclose(pd_logvar, ref_logvar, atol=1e-5, rtol=1e-5)


if __name__ == "__main__":
    key = jax.random.PRNGKey(0)

    # Case 1: module-typical toy shapes (single block; B < 8 and ragged D,
    # handled via full-extent block dims -- no padding, no copies).
    batch, latent, n_mod = 4, 32, 3
    key, zipped = _make_zipped(key, n_mod, batch, latent)
    _check(zipped, (1, batch, latent))

    # Case 2: lane-aligned D, n_prior > 1; tile selection prefers >= 2 grid
    # blocks -> multi-block grid along D.
    batch2, latent2, n_mod2 = 8, 256, 4
    key, zipped2 = _make_zipped(key, n_mod2, batch2, latent2)
    _check(zipped2, (2, batch2, latent2))

    # Case 3: ragged D with a tileable batch axis -> multi-block grid along B.
    batch3, latent3, n_mod3 = 16, 200, 2
    key, zipped3 = _make_zipped(key, n_mod3, batch3, latent3)
    _check(zipped3, (1, batch3, latent3))

    print("KERNEL_OK")
</pallas_src>

<mosaic_0001>
module attributes {stable_mosaic.version = 11 : i64} {
  func.func @_poe_kernel(%arg0: i32, %arg1: i32, %arg2: memref<4x32xf32, #tpu.memory_space<vmem>>, %arg3: memref<4x32xf32, #tpu.memory_space<vmem>>, %arg4: memref<4x32xf32, #tpu.memory_space<vmem>>, %arg5: memref<4x32xf32, #tpu.memory_space<vmem>>, %arg6: memref<4x32xf32, #tpu.memory_space<vmem>>, %arg7: memref<4x32xf32, #tpu.memory_space<vmem>>, %arg8: memref<4x32xf32, #tpu.memory_space<vmem>>, %arg9: memref<4x32xf32, #tpu.memory_space<vmem>>) attributes {dimension_semantics = [#tpu.dimension_semantics<parallel>, #tpu.dimension_semantics<parallel>], iteration_bounds = array<i64: 1, 1>, scalar_prefetch = 0 : i64, scratch_operands = 0 : i64, tpu.core_type = #tpu.core_type<tc>, window_params = [{transform_indices = @transform_0, window_bounds = array<i64: 4, 32>}, {transform_indices = @transform_1, window_bounds = array<i64: 4, 32>}, {transform_indices = @transform_2, window_bounds = array<i64: 4, 32>}, {transform_indices = @transform_3, window_bounds = array<i64: 4, 32>}, {transform_indices = @transform_4, window_bounds = array<i64: 4, 32>}, {transform_indices = @transform_5, window_bounds = array<i64: 4, 32>}, {transform_indices = @transform_6, window_bounds = array<i64: 4, 32>}, {transform_indices = @transform_7, window_bounds = array<i64: 4, 32>}]} {
    %cst = arith.constant 0.000000e+00 : f32
    %0 = math.exp %cst : f32
    %cst_0 = arith.constant 9.99999993E-9 : f32
    %1 = arith.addf %0, %cst_0 : f32
    %cst_1 = arith.constant 1.000000e+00 : f32
    %2 = arith.divf %cst_1, %1 : f32
    %cst_2 = arith.constant 1.000000e+00 : f32
    %3 = arith.mulf %cst_2, %2 : f32
    %4 = vector.broadcast %3 : f32 to vector<4x32xf32>
    %cst_3 = arith.constant 0.000000e+00 : f32
    %5 = vector.broadcast %cst_3 : f32 to vector<4x32xf32>
    %c0 = arith.constant 0 : index
    %c0_4 = arith.constant 0 : index
    %6 = vector.load %arg5[%c0, %c0_4] : memref<4x32xf32, #tpu.memory_space<vmem>>, vector<4x32xf32>
    %c0_5 = arith.constant 0 : index
    %c0_6 = arith.constant 0 : index
    %7 = vector.load %arg2[%c0_5, %c0_6] : memref<4x32xf32, #tpu.memory_space<vmem>>, vector<4x32xf32>
    %8 = math.exp %6 : vector<4x32xf32>
    %cst_7 = arith.constant 9.99999993E-9 : f32
    %9 = vector.broadcast %cst_7 : f32 to vector<4x32xf32>
    %10 = arith.addf %8, %9 : vector<4x32xf32>
    %cst_8 = arith.constant 1.000000e+00 : f32
    %11 = vector.broadcast %cst_8 : f32 to vector<4x32xf32>
    %12 = arith.divf %11, %10 : vector<4x32xf32>
    %13 = arith.addf %4, %12 : vector<4x32xf32>
    %14 = arith.mulf %7, %12 : vector<4x32xf32>
    %15 = arith.addf %5, %14 : vector<4x32xf32>
    %c0_9 = arith.constant 0 : index
    %c0_10 = arith.constant 0 : index
    %16 = vector.load %arg6[%c0_9, %c0_10] : memref<4x32xf32, #tpu.memory_space<vmem>>, vector<4x32xf32>
    %c0_11 = arith.constant 0 : index
    %c0_12 = arith.constant 0 : index
    %17 = vector.load %arg3[%c0_11, %c0_12] : memref<4x32xf32, #tpu.memory_space<vmem>>, vector<4x32xf32>
    %18 = math.exp %16 : vector<4x32xf32>
    %cst_13 = arith.constant 9.99999993E-9 : f32
    %19 = vector.broadcast %cst_13 : f32 to vector<4x32xf32>
    %20 = arith.addf %18, %19 : vector<4x32xf32>
    %cst_14 = arith.constant 1.000000e+00 : f32
    %21 = vector.broadcast %cst_14 : f32 to vector<4x32xf32>
    %22 = arith.divf %21, %20 : vector<4x32xf32>
    %23 = arith.addf %13, %22 : vector<4x32xf32>
    %24 = arith.mulf %17, %22 : vector<4x32xf32>
    %25 = arith.addf %15, %24 : vector<4x32xf32>
    %c0_15 = arith.constant 0 : index
    %c0_16 = arith.constant 0 : index
    %26 = vector.load %arg7[%c0_15, %c0_16] : memref<4x32xf32, #tpu.memory_space<vmem>>, vector<4x32xf32>
    %c0_17 = arith.constant 0 : index
    %c0_18 = arith.constant 0 : index
    %27 = vector.load %arg4[%c0_17, %c0_18] : memref<4x32xf32, #tpu.memory_space<vmem>>, vector<4x32xf32>
    %28 = math.exp %26 : vector<4x32xf32>
    %cst_19 = arith.constant 9.99999993E-9 : f32
    %29 = vector.broadcast %cst_19 : f32 to vector<4x32xf32>
    %30 = arith.addf %28, %29 : vector<4x32xf32>
    %cst_20 = arith.constant 1.000000e+00 : f32
    %31 = vector.broadcast %cst_20 : f32 to vector<4x32xf32>
    %32 = arith.divf %31, %30 : vector<4x32xf32>
    %33 = arith.addf %23, %32 : vector<4x32xf32>
    %34 = arith.mulf %27, %32 : vector<4x32xf32>
    %35 = arith.addf %25, %34 : vector<4x32xf32>
    %cst_21 = arith.constant 1.000000e+00 : f32
    %36 = vector.broadcast %cst_21 : f32 to vector<4x32xf32>
    %37 = arith.divf %36, %33 : vector<4x32xf32>
    %38 = arith.mulf %35, %37 : vector<4x32xf32>
    %c0_22 = arith.constant 0 : index
    %c0_23 = arith.constant 0 : index
    %39 = vector.load %arg8[%c0_22, %c0_23] : memref<4x32xf32, #tpu.memory_space<vmem>>, vector<4x32xf32>
    tpu.vector_store %arg8[%c0_22, %c0_23], %38 {strides = array<i32>} : memref<4x32xf32, #tpu.memory_space<vmem>>, vector<4x32xf32>,
    %40 = math.log %37 : vector<4x32xf32>
    %c0_24 = arith.constant 0 : index
    %c0_25 = arith.constant 0 : index
    %41 = vector.load %arg9[%c0_24, %c0_25] : memref<4x32xf32, #tpu.memory_space<vmem>>, vector<4x32xf32>
    tpu.vector_store %arg9[%c0_24, %c0_25], %40 {strides = array<i32>} : memref<4x32xf32, #tpu.memory_space<vmem>>, vector<4x32xf32>,
    return
  }
  func.func @transform_0(%arg0: i32, %arg1: i32) -> (i32, i32) {
    %c0_i32 = arith.constant 0 : i32
    return %arg0, %arg1 : i32, i32
  }
  func.func @transform_1(%arg0: i32, %arg1: i32) -> (i32, i32) {
    %c0_i32 = arith.constant 0 : i32
    return %arg0, %arg1 : i32, i32
  }
  func.func @transform_2(%arg0: i32, %arg1: i32) -> (i32, i32) {
    %c0_i32 = arith.constant 0 : i32
    return %arg0, %arg1 : i32, i32
  }
  func.func @transform_3(%arg0: i32, %arg1: i32) -> (i32, i32) {
    %c0_i32 = arith.constant 0 : i32
    return %arg0, %arg1 : i32, i32
  }
  func.func @transform_4(%arg0: i32, %arg1: i32) -> (i32, i32) {
    %c0_i32 = arith.constant 0 : i32
    return %arg0, %arg1 : i32, i32
  }
  func.func @transform_5(%arg0: i32, %arg1: i32) -> (i32, i32) {
    %c0_i32 = arith.constant 0 : i32
    return %arg0, %arg1 : i32, i32
  }
  func.func @transform_6(%arg0: i32, %arg1: i32) -> (i32, i32) {
    %c0_i32 = arith.constant 0 : i32
    return %arg0, %arg1 : i32, i32
  }
  func.func @transform_7(%arg0: i32, %arg1: i32) -> (i32, i32) {
    %c0_i32 = arith.constant 0 : i32
    return %arg0, %arg1 : i32, i32
  }
}

</mosaic_0001>

<bundles_post_ra>
// kernel: tpu_custom_call.1
= control target key start
LH: loop header
LB: loop body
LE: loop exit
PB: predicated region body
PF: predicated region fallthrough
CT: control target
= control target key end

     0   :  { %13 = vsyncpa [#allocation3], 0  ;;  %s341_s0 = inlined_call_operand.hbm [shape: f32[4,32], index: 0, kind: input, shape index: {}]   ;;  %s342_s1 = inlined_call_operand.hbm [shape: f32[4,32], index: 1, kind: input, shape index: {}]   ;;  %s343_s2 = inlined_call_operand.vmem [shape: f32[4,32], index: 2, kind: input, shape index: {}]   ;;  %s344_s3 = inlined_call_operand.vmem [shape: f32[4,32], index: 3, kind: input, shape index: {}]   ;;  %s345_s4 = inlined_call_operand.vmem [shape: f32[4,32], index: 4, kind: input, shape index: {}]   ;;  %s346_s5 = inlined_call_operand.vmem [shape: f32[4,32], index: 5, kind: input, shape index: {}]   ;;  %s347_s6 = inlined_call_operand.hbm [shape: f32[4,32], index: 6, kind: output, shape index: {0}]   ;;  %s348_s7 = inlined_call_operand.hbm [shape: f32[4,32], index: 7, kind: output, shape index: {1}]  }
   0x1   :  { %14 = vsyncpa [#allocation6], 0 }
   0x2   :  { %15 = vsyncpa [#allocation4], 0 }
   0x3   :  { %16 = vsyncpa [#allocation9], 0  ;;  %s235_s24 = smov [#allocation2]   ;;  %s236_s26 = smov [#allocation5]  }
   0x4   :  { %s23_s25 = sshll.u32 %s235_s24, 4  ;;  %s33_s27 = sshll.u32 %s236_s26, 4  ;;  %s24_s25 = int_to_ptr.vmem [resolvable:$true] %s23_s25  ;;  %s34_s27 = int_to_ptr.vmem [resolvable:$true] %s33_s27 }
   0x5   :  { %s139_s30 = scalar_lea.hbm %s341_s0, 64 }
   0x6   :  { %p140_p0 = scmp.ne.s32.totalorder %s341_s0, %s139_s30  ;;  %p143_p1 = scmp.lt.u32.totalorder %s139_s30, %s341_s0 }
   0x8   :  { %p145_p2 = pnand %p143_p1, %p140_p0 }
   0xa   :  { %148 = shalt.err (!%p145_p2)
}
   0xb   :  { %s149_s12 = scalar_lea.vmem %s24_s25, 64  ;;  %p154_p4 = scmp.lt.s32.totalorder %s24_s25, %s24_s25 }
   0xc   :  { %p150_p3 = scmp.ne.s32.totalorder %s24_s25, %s149_s12  ;;  %p155_p5 = scmp.lt.s32.totalorder %s149_s12, %s149_s12 }
   0xe   :  { %p156_p6 = por %p155_p5, %p154_p4 }
  0x10   :  { %p157_p7 = pnand %p156_p6, %p150_p3 }
  0x12   :  { %160 = shalt.err (!%p157_p7)
}
  0x13   :  { %26 = dma.hbm_to_vmem [thread:$0]  %s341_s0, 64, %s24_s25, [#allocation3]  }
  0x14   :  { %s161_s17 = scalar_lea.hbm %s342_s1, 64 }
  0x15   :  { %p162_p8 = scmp.ne.s32.totalorder %s342_s1, %s161_s17  ;;  %p165_p9 = scmp.lt.u32.totalorder %s161_s17, %s342_s1 }
  0x17   :  { %p167_p10 = pnand %p165_p9, %p162_p8 }
  0x19   :  { %170 = shalt.err (!%p167_p10)
}
  0x1a   :  { %s171_s22 = scalar_lea.vmem %s34_s27, 64  ;;  %p176_p12 = scmp.lt.s32.totalorder %s34_s27, %s34_s27 }
  0x1b   :  { %p172_p11 = scmp.ne.s32.totalorder %s34_s27, %s171_s22  ;;  %p177_p13 = scmp.lt.s32.totalorder %s171_s22, %s171_s22 }
  0x1d   :  { %p178_p0 = por %p177_p13, %p176_p12 }
  0x1f   :  { %p179_p1 = pnand %p178_p0, %p172_p11 }
  0x21   :  { %182 = shalt.err (!%p179_p1)
}
  0x22   :  { %36 = dma.hbm_to_vmem [thread:$0]  %s342_s1, 64, %s34_s27, [#allocation6]  }
  0x23   :  { %227 = dma.done.wait [#allocation3], 64  }
  0x24   :  { %228 = vsyncadd [#allocation3], 4294967232 }
  0x25   :  { %229 = dma.done.wait [#allocation6], 64  }
  0x26   :  { %230 = vsyncadd [#allocation6], 4294967232  ;;  %v51_v0 = vld [vmem:[%s344_s3] sm:$0xf]  ;;  %v62_v17 = vld [vmem:[#allocation5] sm:$0xf] }
  0x27   :  { %v61_v1 = vld [vmem:[%s345_s4] sm:$0xf]  ;;  %v53_v2 = vmul.f32 1.442695, %v51_v0  ;;  %s237_s4 = smov [#allocation7]   ;;  %vm84_vm0 = vcmask 257024  }
  0x28   :  { %v63_v3 = vmul.f32 1.442695, %v61_v1  ;;  %v71_v4 = vld [vmem:[%s346_s5] sm:$0xf]  ;;  %s95_s5 = sshll.u32 %s237_s4, 4  ;;  %s96_s5 = int_to_ptr.vmem [resolvable:$true] %s95_s5 }
  0x29   :  { %123 = vpow2.f32 %v53_v2  ;;  %v73_v5 = vmul.f32 1.442695, %v71_v4  ;;  %v52_v16 = vld [vmem:[#allocation2] sm:$0xf]  ;;  %s183_s27 = scalar_lea.vmem %s96_s5, 64  ;;  %p188_p3 = scmp.lt.s32.totalorder %s96_s5, %s96_s5 }
  0x2a   :  { %125 = vpow2.f32 %v63_v3  ;;  %v72_v22 = vld [vmem:[%s343_s2] sm:$0xf]  ;;  %p184_p2 = scmp.ne.s32.totalorder %s96_s5, %s183_s27  ;;  %p189_p4 = scmp.lt.s32.totalorder %s183_s27, %s183_s27 }
  0x2b   :  { %127 = vpow2.f32 %v73_v5 }
  0x2c   :  { %p190_p5 = por %p189_p4, %p188_p3 }
  0x2e   :  { %p191_p6 = pnand %p190_p5, %p184_p2 }
  0x33   :  { %v124_v6 = vpop.eup %123 }
  0x34   :  { %v126_v7 = vpop.eup %125  ;;  %v55_v8 = vadd.f32 1e-08, %v124_v6 }
  0x35   :  { %v128_v9 = vpop.eup %127  ;;  %v65_v10 = vadd.f32 1e-08, %v126_v7 }
  0x36   :  { %129 = vrcp.f32 %v55_v8  ;;  %v75_v11 = vadd.f32 1e-08, %v128_v9 }
  0x37   :  { %131 = vrcp.f32 %v65_v10 }
  0x38   :  { %133 = vrcp.f32 %v75_v11 }
  0x40   :  { %v130_v12 = vpop.eup %129 }
  0x41   :  { %v132_v13 = vpop.eup %131  ;;  %v58_v14 = vadd.f32 1.0, %v130_v12  ;;  %v59_v20 = vmul.f32 %v130_v12, %v52_v16 }
  0x42   :  { %v134_v15 = vpop.eup %133  ;;  %v69_v21 = vmul.f32 %v132_v13, %v62_v17 }
  0x43   :  { %v68_v18 = vadd.f32 %v132_v13, %v58_v14  ;;  %v79_v24 = vmul.f32 %v134_v15, %v72_v22 }
  0x44   :  { %v70_v23 = vadd.f32 %v69_v21, %v59_v20 }
  0x45   :  { %v78_v19 = vadd.f32 %v134_v15, %v68_v18 }
  0x46   :  { %v80_v25 = vadd.f32 %v79_v24, %v70_v23 }
  0x47   :  { %135 = vrcp.f32 %v78_v19 }
  0x51   :  { %v136_v26 = vpop.eup %135 }
  0x52   :  { %v83_v27 = vmul.f32 %v136_v26, %v80_v25  ;;  %137 = vlog2.f32 %v136_v26 }
  0x54   :  { %85 = vst.msk [vmem:[#allocation7] sm:$0xf] %vm84_vm0, %v83_v27 }
  0x55   :  { %194 = shalt.err (!%p191_p6)
}
  0x56   :  { %s195_s9 = scalar_lea.hbm %s347_s6, 64 }
  0x57   :  { %p196_p7 = scmp.ne.s32.totalorder %s347_s6, %s195_s9  ;;  %p199_p8 = scmp.lt.u32.totalorder %s195_s9, %s347_s6 }
  0x59   :  { %p201_p9 = pnand %p199_p8, %p196_p7 }
  0x5b   :  { %204 = shalt.err (!%p201_p9)
}
  0x5c   :  { %98 = dma.vmem_to_hbm [thread:$0]  %s96_s5, 64, %s347_s6, [#allocation4]   ;;  %v138_v28 = vpop.eup %137 }
  0x5d   :  { %s238_s16 = smov [#allocation8]   ;;  %v87_v29 = vmul.f32 0.6931472, %v138_v28 }
  0x5e   :  { %s105_s17 = sshll.u32 %s238_s16, 4  ;;  %s106_s17 = int_to_ptr.vmem [resolvable:$true] %s105_s17 }
  0x5f   :  { %88 = vst.msk [vmem:[#allocation8] sm:$0xf] %vm84_vm0, %v87_v29  ;;  %s205_s18 = scalar_lea.vmem %s106_s17, 64  ;;  %p210_p11 = scmp.lt.s32.totalorder %s106_s17, %s106_s17 }
  0x60   :  { %p206_p10 = scmp.ne.s32.totalorder %s106_s17, %s205_s18  ;;  %p211_p12 = scmp.lt.s32.totalorder %s205_s18, %s205_s18 }
  0x62   :  { %p212_p13 = por %p211_p12, %p210_p11 }
  0x64   :  { %p213_p0 = pnand %p212_p13, %p206_p10 }
  0x66   :  { %216 = shalt.err (!%p213_p0)
}
  0x67   :  { %s217_s21 = scalar_lea.hbm %s348_s7, 64 }
  0x68   :  { %p218_p1 = scmp.ne.s32.totalorder %s348_s7, %s217_s21  ;;  %p221_p2 = scmp.lt.u32.totalorder %s217_s21, %s348_s7 }
  0x6a   :  { %p223_p3 = pnand %p221_p2, %p218_p1 }
  0x6c   :  { %226 = shalt.err (!%p223_p3)
}
  0x6d   :  { %108 = dma.vmem_to_hbm [thread:$0]  %s106_s17, 64, %s348_s7, [#allocation9]  }
  0x6e   :  { %231 = dma.done.wait [#allocation4], 64  }
  0x6f   :  { %232 = vsyncadd [#allocation4], 4294967232 }
  0x70   :  { %233 = dma.done.wait [#allocation9], 64  }
  0x71   :  { %234 = vsyncadd [#allocation9], 4294967232 }
  0x72   :  { %115 = vsyncpa [#allocation3], 1 }
  0x73   :  { %116 = vsyncpa [#allocation6], 1 }
  0x74   :  { %117 = vsyncpa [#allocation4], 1 }
  0x75   :  { %118 = vsyncpa [#allocation9], 1 }

</bundles_post_ra>
